<compile_context>
chip_gen: v5e
topology: v5e:2x2
jax: 0.10.0
libtpu: 0.0.40
codegen_flags: <defaults>
</compile_context>

<pallas_src>
import jax
import jax.numpy as jnp
from jax.experimental import pallas as pl
from jax.experimental.pallas import tpu as pltpu


def _gcn_kernel(x_ref, w_ref, adj_ref, b_ref, o_ref):
    # x_ref:   (TB, N, F_in)   bf16  -- TB graph slices for this grid step
    # w_ref:   (F_in, F_out)   bf16  -- resident (constant index_map)
    # adj_ref: (N, N)          bf16  -- resident
    # b_ref:   (1, F_out)      f32   -- resident
    # o_ref:   (TB, N, F_out)  f32
    tb, n, f_in = x_ref.shape
    f_out = w_ref.shape[1]

    # --- Stage 1: support = x @ W, fused across all TB slices ---------------
    # One large MXU matmul: (TB*N, F_in) @ (F_in, F_out); bf16 in, f32 acc.
    x2 = x_ref[...].reshape(tb * n, f_in)
    support = jnp.dot(x2, w_ref[...], preferred_element_type=jnp.float32)
    support = support.reshape(tb, n, f_out).astype(jnp.bfloat16)

    adj = adj_ref[...]        # (N, N)     bf16
    bias = b_ref[...]         # (1, F_out) f32

    # --- Stage 2: out = adj @ support, per slice (rank-2 MXU dots) ----------
    for b in range(tb):       # static unroll
        out_b = jnp.dot(adj, support[b], preferred_element_type=jnp.float32)
        o_ref[b] = (out_b + bias).astype(o_ref.dtype)


def graph_convolution(x, adj, weight, bias, *, tb=8):
    """x: (B, T, N, F_in), adj: (N, N), weight: (F_in, F_out), bias: (F_out,)."""
    B, T, N, F_in = x.shape
    F_out = weight.shape[1]
    BT = B * T

    # Slice-batch size: amortize per-step overhead; keep >=2 grid steps when
    # possible so v7x's second TensorCore is used.
    tb = max(1, min(tb, BT))
    if BT > 1 and BT <= tb:
        tb = (BT + 1) // 2
    G = (BT + tb - 1) // tb
    BT_pad = G * tb

    x_flat = x.reshape(BT, N, F_in)
    if BT_pad != BT:
        x_flat = jnp.pad(x_flat, ((0, BT_pad - BT), (0, 0), (0, 0)))

    # bf16 MXU inputs (halves DMA bytes); accumulation stays f32 in-kernel.
    x_bf = x_flat.astype(jnp.bfloat16)
    w_bf = weight.astype(jnp.bfloat16)
    adj_bf = adj.astype(jnp.bfloat16)
    bias2d = bias.reshape(1, F_out).astype(jnp.float32)

    flops = 2 * BT_pad * N * F_in * F_out + 2 * BT_pad * N * N * F_out
    bytes_accessed = (x_bf.size * 2 + w_bf.size * 2 + adj_bf.size * 2
                      + bias2d.size * 4 + BT_pad * N * F_out * 4)

    out_flat = pl.pallas_call(
        _gcn_kernel,
        out_shape=jax.ShapeDtypeStruct((BT_pad, N, F_out), x.dtype),
        grid_spec=pltpu.PrefetchScalarGridSpec(
            num_scalar_prefetch=0,
            grid=(G,),
            in_specs=[
                pl.BlockSpec((tb, N, F_in), lambda i: (i, 0, 0)),
                pl.BlockSpec((F_in, F_out), lambda i: (0, 0)),
                pl.BlockSpec((N, N), lambda i: (0, 0)),
                pl.BlockSpec((1, F_out), lambda i: (0, 0)),
            ],
            out_specs=pl.BlockSpec((tb, N, F_out), lambda i: (i, 0, 0)),
        ),
        compiler_params=pltpu.CompilerParams(
            dimension_semantics=("parallel",),
            vmem_limit_bytes=32 * 1024 * 1024,
        ),
        cost_estimate=pl.CostEstimate(
            flops=flops, transcendentals=0, bytes_accessed=bytes_accessed),
    )(x_bf, w_bf, adj_bf, bias2d)

    return out_flat[:BT].reshape(B, T, N, F_out)


if __name__ == "__main__":
    # Small, deterministic example shapes consistent with the forward:
    #   x:   (B, T, N, F_in),  adj: (N, N)
    # B*T = 16 -> grid of 2 steps with TB = 8 (TB*N = 128-row MXU tiles).
    B, T, N = 2, 8, 16
    F_in, F_out = 8, 32

    key = jax.random.PRNGKey(0)
    kx, kadj, kw, kb = jax.random.split(key, 4)

    x = jax.random.normal(kx, (B, T, N, F_in), dtype=jnp.float32)
    adj = jax.random.uniform(kadj, (N, N), dtype=jnp.float32)

    # reset_parameters(): uniform(-stdv, stdv) with stdv = 1/sqrt(out_features)
    stdv = 1.0 / jnp.sqrt(jnp.float32(F_out))
    weight = jax.random.uniform(kw, (F_in, F_out), dtype=jnp.float32,
                                minval=-stdv, maxval=stdv)
    bias = jax.random.uniform(kb, (F_out,), dtype=jnp.float32,
                              minval=-stdv, maxval=stdv)

    out = graph_convolution(x, adj, weight, bias)
    out = jax.block_until_ready(out)
    assert out.shape == (B, T, N, F_out)

    # Pure-JAX reference mirroring the kernel's bf16 MXU inputs / f32 accumulation.
    xb = x.astype(jnp.bfloat16)
    wb = weight.astype(jnp.bfloat16)
    ab = adj.astype(jnp.bfloat16)
    support_ref = jnp.einsum("btnk,ko->btno", xb, wb,
                             preferred_element_type=jnp.float32)
    ref = jnp.einsum("nm,btmo->btno", ab, support_ref.astype(jnp.bfloat16),
                     preferred_element_type=jnp.float32) + bias
    assert jnp.allclose(out, ref, atol=1e-2, rtol=1e-2), "mismatch vs reference"

    print("KERNEL_OK")
</pallas_src>

<mosaic_0001>
module attributes {stable_mosaic.version = 11 : i64} {
  func.func @_gcn_kernel(%arg0: i32, %arg1: memref<8x16x8xbf16, #tpu.memory_space<vmem>>, %arg2: memref<8x32xbf16, #tpu.memory_space<vmem>>, %arg3: memref<16x16xbf16, #tpu.memory_space<vmem>>, %arg4: memref<1x32xf32, #tpu.memory_space<vmem>>, %arg5: memref<8x16x32xf32, #tpu.memory_space<vmem>>) attributes {dimension_semantics = [#tpu.dimension_semantics<parallel>], iteration_bounds = array<i64: 2>, scalar_prefetch = 0 : i64, scratch_operands = 0 : i64, tpu.core_type = #tpu.core_type<tc>, window_params = [{transform_indices = @transform_0, window_bounds = array<i64: 8, 16, 8>}, {pipeline_mode = #tpu.pipeline_mode<synchronous>, transform_indices = @transform_1, window_bounds = array<i64: 8, 32>}, {pipeline_mode = #tpu.pipeline_mode<synchronous>, transform_indices = @transform_2, window_bounds = array<i64: 16, 16>}, {pipeline_mode = #tpu.pipeline_mode<synchronous>, transform_indices = @transform_3, window_bounds = array<i64: 1, 32>}, {transform_indices = @transform_4, window_bounds = array<i64: 8, 16, 32>}]} {
    %c0 = arith.constant 0 : index
    %c0_0 = arith.constant 0 : index
    %c0_1 = arith.constant 0 : index
    %0 = vector.load %arg1[%c0, %c0_0, %c0_1] : memref<8x16x8xbf16, #tpu.memory_space<vmem>>, vector<8x16x8xbf16>
    %1 = vector.shape_cast %0 : vector<8x16x8xbf16> to vector<128x8xbf16>
    %c0_2 = arith.constant 0 : index
    %c0_3 = arith.constant 0 : index
    %2 = vector.load %arg2[%c0_2, %c0_3] : memref<8x32xbf16, #tpu.memory_space<vmem>>, vector<8x32xbf16>
    %cst = arith.constant dense<0.000000e+00> : vector<128x32xf32>
    %3 = tpu.matmul %1, %2, %cst {dimension_numbers = #tpu.dot_dimension_numbers<[1], [0], [0], [1], [0, 0, 1, 1], [], []>} : vector<128x8xbf16>, vector<8x32xbf16>, vector<128x32xf32> -> vector<128x32xf32>
    %4 = vector.shape_cast %3 : vector<128x32xf32> to vector<8x16x32xf32>
    %5 = arith.truncf %4 : vector<8x16x32xf32> to vector<8x16x32xbf16>
    %c0_4 = arith.constant 0 : index
    %c0_5 = arith.constant 0 : index
    %6 = vector.load %arg3[%c0_4, %c0_5] : memref<16x16xbf16, #tpu.memory_space<vmem>>, vector<16x16xbf16>
    %c0_6 = arith.constant 0 : index
    %c0_7 = arith.constant 0 : index
    %7 = vector.load %arg4[%c0_6, %c0_7] : memref<1x32xf32, #tpu.memory_space<vmem>>, vector<1x32xf32>
    %8 = vector.extract_strided_slice %5 {offsets = [0, 0, 0], sizes = [1, 16, 32], strides = [1, 1, 1]} : vector<8x16x32xbf16> to vector<1x16x32xbf16>
    %9 = vector.shape_cast %8 : vector<1x16x32xbf16> to vector<16x32xbf16>
    %cst_8 = arith.constant dense<0.000000e+00> : vector<16x32xf32>
    %10 = tpu.matmul %6, %9, %cst_8 {dimension_numbers = #tpu.dot_dimension_numbers<[1], [0], [0], [1], [0, 0, 1, 1], [], []>} : vector<16x16xbf16>, vector<16x32xbf16>, vector<16x32xf32> -> vector<16x32xf32>
    %11 = vector.broadcast %7 : vector<1x32xf32> to vector<16x32xf32>
    %12 = arith.addf %10, %11 : vector<16x32xf32>
    %c0_9 = arith.constant 0 : index
    %c0_10 = arith.constant 0 : index
    %c0_11 = arith.constant 0 : index
    %13 = vector.load %arg5[%c0_9, %c0_10, %c0_11] : memref<8x16x32xf32, #tpu.memory_space<vmem>>, vector<1x16x32xf32>
    %14 = vector.shape_cast %13 : vector<1x16x32xf32> to vector<16x32xf32>
    %15 = vector.shape_cast %12 : vector<16x32xf32> to vector<1x16x32xf32>
    tpu.vector_store %arg5[%c0_9, %c0_10, %c0_11], %15 {strides = array<i32>} : memref<8x16x32xf32, #tpu.memory_space<vmem>>, vector<1x16x32xf32>,
    %16 = vector.extract_strided_slice %5 {offsets = [1, 0, 0], sizes = [1, 16, 32], strides = [1, 1, 1]} : vector<8x16x32xbf16> to vector<1x16x32xbf16>
    %17 = vector.shape_cast %16 : vector<1x16x32xbf16> to vector<16x32xbf16>
    %cst_12 = arith.constant dense<0.000000e+00> : vector<16x32xf32>
    %18 = tpu.matmul %6, %17, %cst_12 {dimension_numbers = #tpu.dot_dimension_numbers<[1], [0], [0], [1], [0, 0, 1, 1], [], []>} : vector<16x16xbf16>, vector<16x32xbf16>, vector<16x32xf32> -> vector<16x32xf32>
    %19 = vector.broadcast %7 : vector<1x32xf32> to vector<16x32xf32>
    %20 = arith.addf %18, %19 : vector<16x32xf32>
    %c1 = arith.constant 1 : index
    %c0_13 = arith.constant 0 : index
    %c0_14 = arith.constant 0 : index
    %21 = vector.load %arg5[%c1, %c0_13, %c0_14] : memref<8x16x32xf32, #tpu.memory_space<vmem>>, vector<1x16x32xf32>
    %22 = vector.shape_cast %21 : vector<1x16x32xf32> to vector<16x32xf32>
    %23 = vector.shape_cast %20 : vector<16x32xf32> to vector<1x16x32xf32>
    tpu.vector_store %arg5[%c1, %c0_13, %c0_14], %23 {strides = array<i32>} : memref<8x16x32xf32, #tpu.memory_space<vmem>>, vector<1x16x32xf32>,
    %24 = vector.extract_strided_slice %5 {offsets = [2, 0, 0], sizes = [1, 16, 32], strides = [1, 1, 1]} : vector<8x16x32xbf16> to vector<1x16x32xbf16>
    %25 = vector.shape_cast %24 : vector<1x16x32xbf16> to vector<16x32xbf16>
    %cst_15 = arith.constant dense<0.000000e+00> : vector<16x32xf32>
    %26 = tpu.matmul %6, %25, %cst_15 {dimension_numbers = #tpu.dot_dimension_numbers<[1], [0], [0], [1], [0, 0, 1, 1], [], []>} : vector<16x16xbf16>, vector<16x32xbf16>, vector<16x32xf32> -> vector<16x32xf32>
    %27 = vector.broadcast %7 : vector<1x32xf32> to vector<16x32xf32>
    %28 = arith.addf %26, %27 : vector<16x32xf32>
    %c2 = arith.constant 2 : index
    %c0_16 = arith.constant 0 : index
    %c0_17 = arith.constant 0 : index
    %29 = vector.load %arg5[%c2, %c0_16, %c0_17] : memref<8x16x32xf32, #tpu.memory_space<vmem>>, vector<1x16x32xf32>
    %30 = vector.shape_cast %29 : vector<1x16x32xf32> to vector<16x32xf32>
    %31 = vector.shape_cast %28 : vector<16x32xf32> to vector<1x16x32xf32>
    tpu.vector_store %arg5[%c2, %c0_16, %c0_17], %31 {strides = array<i32>} : memref<8x16x32xf32, #tpu.memory_space<vmem>>, vector<1x16x32xf32>,
    %32 = vector.extract_strided_slice %5 {offsets = [3, 0, 0], sizes = [1, 16, 32], strides = [1, 1, 1]} : vector<8x16x32xbf16> to vector<1x16x32xbf16>
    %33 = vector.shape_cast %32 : vector<1x16x32xbf16> to vector<16x32xbf16>
    %cst_18 = arith.constant dense<0.000000e+00> : vector<16x32xf32>
    %34 = tpu.matmul %6, %33, %cst_18 {dimension_numbers = #tpu.dot_dimension_numbers<[1], [0], [0], [1], [0, 0, 1, 1], [], []>} : vector<16x16xbf16>, vector<16x32xbf16>, vector<16x32xf32> -> vector<16x32xf32>
    %35 = vector.broadcast %7 : vector<1x32xf32> to vector<16x32xf32>
    %36 = arith.addf %34, %35 : vector<16x32xf32>
    %c3 = arith.constant 3 : index
    %c0_19 = arith.constant 0 : index
    %c0_20 = arith.constant 0 : index
    %37 = vector.load %arg5[%c3, %c0_19, %c0_20] : memref<8x16x32xf32, #tpu.memory_space<vmem>>, vector<1x16x32xf32>
    %38 = vector.shape_cast %37 : vector<1x16x32xf32> to vector<16x32xf32>
    %39 = vector.shape_cast %36 : vector<16x32xf32> to vector<1x16x32xf32>
    tpu.vector_store %arg5[%c3, %c0_19, %c0_20], %39 {strides = array<i32>} : memref<8x16x32xf32, #tpu.memory_space<vmem>>, vector<1x16x32xf32>,
    %40 = vector.extract_strided_slice %5 {offsets = [4, 0, 0], sizes = [1, 16, 32], strides = [1, 1, 1]} : vector<8x16x32xbf16> to vector<1x16x32xbf16>
    %41 = vector.shape_cast %40 : vector<1x16x32xbf16> to vector<16x32xbf16>
    %cst_21 = arith.constant dense<0.000000e+00> : vector<16x32xf32>
    %42 = tpu.matmul %6, %41, %cst_21 {dimension_numbers = #tpu.dot_dimension_numbers<[1], [0], [0], [1], [0, 0, 1, 1], [], []>} : vector<16x16xbf16>, vector<16x32xbf16>, vector<16x32xf32> -> vector<16x32xf32>
    %43 = vector.broadcast %7 : vector<1x32xf32> to vector<16x32xf32>
    %44 = arith.addf %42, %43 : vector<16x32xf32>
    %c4 = arith.constant 4 : index
    %c0_22 = arith.constant 0 : index
    %c0_23 = arith.constant 0 : index
    %45 = vector.load %arg5[%c4, %c0_22, %c0_23] : memref<8x16x32xf32, #tpu.memory_space<vmem>>, vector<1x16x32xf32>
    %46 = vector.shape_cast %45 : vector<1x16x32xf32> to vector<16x32xf32>
    %47 = vector.shape_cast %44 : vector<16x32xf32> to vector<1x16x32xf32>
    tpu.vector_store %arg5[%c4, %c0_22, %c0_23], %47 {strides = array<i32>} : memref<8x16x32xf32, #tpu.memory_space<vmem>>, vector<1x16x32xf32>,
    %48 = vector.extract_strided_slice %5 {offsets = [5, 0, 0], sizes = [1, 16, 32], strides = [1, 1, 1]} : vector<8x16x32xbf16> to vector<1x16x32xbf16>
    %49 = vector.shape_cast %48 : vector<1x16x32xbf16> to vector<16x32xbf16>
    %cst_24 = arith.constant dense<0.000000e+00> : vector<16x32xf32>
    %50 = tpu.matmul %6, %49, %cst_24 {dimension_numbers = #tpu.dot_dimension_numbers<[1], [0], [0], [1], [0, 0, 1, 1], [], []>} : vector<16x16xbf16>, vector<16x32xbf16>, vector<16x32xf32> -> vector<16x32xf32>
    %51 = vector.broadcast %7 : vector<1x32xf32> to vector<16x32xf32>
    %52 = arith.addf %50, %51 : vector<16x32xf32>
    %c5 = arith.constant 5 : index
    %c0_25 = arith.constant 0 : index
    %c0_26 = arith.constant 0 : index
    %53 = vector.load %arg5[%c5, %c0_25, %c0_26] : memref<8x16x32xf32, #tpu.memory_space<vmem>>, vector<1x16x32xf32>
    %54 = vector.shape_cast %53 : vector<1x16x32xf32> to vector<16x32xf32>
    %55 = vector.shape_cast %52 : vector<16x32xf32> to vector<1x16x32xf32>
    tpu.vector_store %arg5[%c5, %c0_25, %c0_26], %55 {strides = array<i32>} : memref<8x16x32xf32, #tpu.memory_space<vmem>>, vector<1x16x32xf32>,
    %56 = vector.extract_strided_slice %5 {offsets = [6, 0, 0], sizes = [1, 16, 32], strides = [1, 1, 1]} : vector<8x16x32xbf16> to vector<1x16x32xbf16>
    %57 = vector.shape_cast %56 : vector<1x16x32xbf16> to vector<16x32xbf16>
    %cst_27 = arith.constant dense<0.000000e+00> : vector<16x32xf32>
    %58 = tpu.matmul %6, %57, %cst_27 {dimension_numbers = #tpu.dot_dimension_numbers<[1], [0], [0], [1], [0, 0, 1, 1], [], []>} : vector<16x16xbf16>, vector<16x32xbf16>, vector<16x32xf32> -> vector<16x32xf32>
    %59 = vector.broadcast %7 : vector<1x32xf32> to vector<16x32xf32>
    %60 = arith.addf %58, %59 : vector<16x32xf32>
    %c6 = arith.constant 6 : index
    %c0_28 = arith.constant 0 : index
    %c0_29 = arith.constant 0 : index
    %61 = vector.load %arg5[%c6, %c0_28, %c0_29] : memref<8x16x32xf32, #tpu.memory_space<vmem>>, vector<1x16x32xf32>
    %62 = vector.shape_cast %61 : vector<1x16x32xf32> to vector<16x32xf32>
    %63 = vector.shape_cast %60 : vector<16x32xf32> to vector<1x16x32xf32>
    tpu.vector_store %arg5[%c6, %c0_28, %c0_29], %63 {strides = array<i32>} : memref<8x16x32xf32, #tpu.memory_space<vmem>>, vector<1x16x32xf32>,
    %64 = vector.extract_strided_slice %5 {offsets = [7, 0, 0], sizes = [1, 16, 32], strides = [1, 1, 1]} : vector<8x16x32xbf16> to vector<1x16x32xbf16>
    %65 = vector.shape_cast %64 : vector<1x16x32xbf16> to vector<16x32xbf16>
    %cst_30 = arith.constant dense<0.000000e+00> : vector<16x32xf32>
    %66 = tpu.matmul %6, %65, %cst_30 {dimension_numbers = #tpu.dot_dimension_numbers<[1], [0], [0], [1], [0, 0, 1, 1], [], []>} : vector<16x16xbf16>, vector<16x32xbf16>, vector<16x32xf32> -> vector<16x32xf32>
    %67 = vector.broadcast %7 : vector<1x32xf32> to vector<16x32xf32>
    %68 = arith.addf %66, %67 : vector<16x32xf32>
    %c7 = arith.constant 7 : index
    %c0_31 = arith.constant 0 : index
    %c0_32 = arith.constant 0 : index
    %69 = vector.load %arg5[%c7, %c0_31, %c0_32] : memref<8x16x32xf32, #tpu.memory_space<vmem>>, vector<1x16x32xf32>
    %70 = vector.shape_cast %69 : vector<1x16x32xf32> to vector<16x32xf32>
    %71 = vector.shape_cast %68 : vector<16x32xf32> to vector<1x16x32xf32>
    tpu.vector_store %arg5[%c7, %c0_31, %c0_32], %71 {strides = array<i32>} : memref<8x16x32xf32, #tpu.memory_space<vmem>>, vector<1x16x32xf32>,
    return
  }
  func.func @transform_0(%arg0: i32) -> (i32, i32, i32) {
    %c0_i32 = arith.constant 0 : i32
    %c0_i32_0 = arith.constant 0 : i32
    %c0_i32_1 = arith.constant 0 : i32
    return %arg0, %c0_i32, %c0_i32_0 : i32, i32, i32
  }
  func.func @transform_1(%arg0: i32) -> (i32, i32) {
    %c0_i32 = arith.constant 0 : i32
    %c0_i32_0 = arith.constant 0 : i32
    %c0_i32_1 = arith.constant 0 : i32
    return %c0_i32, %c0_i32_0 : i32, i32
  }
  func.func @transform_2(%arg0: i32) -> (i32, i32) {
    %c0_i32 = arith.constant 0 : i32
    %c0_i32_0 = arith.constant 0 : i32
    %c0_i32_1 = arith.constant 0 : i32
    return %c0_i32, %c0_i32_0 : i32, i32
  }
  func.func @transform_3(%arg0: i32) -> (i32, i32) {
    %c0_i32 = arith.constant 0 : i32
    %c0_i32_0 = arith.constant 0 : i32
    %c0_i32_1 = arith.constant 0 : i32
    return %c0_i32, %c0_i32_0 : i32, i32
  }
  func.func @transform_4(%arg0: i32) -> (i32, i32, i32) {
    %c0_i32 = arith.constant 0 : i32
    %c0_i32_0 = arith.constant 0 : i32
    %c0_i32_1 = arith.constant 0 : i32
    return %arg0, %c0_i32, %c0_i32_0 : i32, i32, i32
  }
}

</mosaic_0001>

<bundles_post_ra>
// kernel: tpu_custom_call.1
= control target key start
LH: loop header
LB: loop body
LE: loop exit
PB: predicated region body
PF: predicated region fallthrough
CT: control target
= control target key end

     0   :  { %9 = vsyncpa [#allocation3], 0  ;;  %s1008_s0 = inlined_call_operand.vmem [shape: bf16[16,16,8], index: 0, kind: input, shape index: {}]   ;;  %s1009_s1 = inlined_call_operand.vmem [shape: bf16[8,32], index: 1, kind: input, shape index: {}]   ;;  %s1010_s2 = inlined_call_operand.vmem [shape: bf16[16,16], index: 2, kind: input, shape index: {}]   ;;  %s1011_s3 = inlined_call_operand.vmem [shape: f32[1,32], index: 3, kind: input, shape index: {}]   ;;  %s1012_s4 = inlined_call_operand.hbm [shape: f32[16,16,32], index: 4, kind: output, shape index: {}]  }
   0x1   :  { %11 = vsyncpa [#allocation3 + $0x1], 0  ;;  %s860_s15 = smov 0   ;;  %s862_s16 = smov 0  }
   0x2   :  { %s864_s17 = smov 0   ;;  %s866_s18 = smov 0  }
   0x3 LB: > { %s881_s19 = sadd.s32 4294967295, %s831_s18   ;;  %s632_s20 = sadd.s32 4294967294, %s831_s18   ;;  %s831_s18 = sphi %s866_s18, %s1018_s18   ;;  %s827_s17 = sphi %s864_s17, %s1017_s17   ;;  %s823_s16 = sphi %s862_s16, %s1016_s16   ;;  %s819_s15 = sphi %s860_s15, %s1015_s15  }
   0x4   : > { %s885_s21 = sadd.s32 1, %s831_s18   ;;  %s113_s22 = sadd.s32 1, %s827_s17 }
   0x5   : > { %s110_s23 = ssub.s32 %s831_s18, %s885_s21  ;;  %p123_p0 = scmp.ne.s32.totalorder %s827_s17, %s823_s16 }
   0x6   : > { %p111_p1 = scmp.eq.s32.totalorder %s110_s23, 0  ;;  %p124_p2 = scmp.eq.s32.totalorder %s881_s19, 1 }
   0x7   : > { %p129_p3 = scmp.ne.s32.totalorder %s823_s16, %s819_s15  ;;  %p130_p4 = scmp.eq.s32.totalorder %s632_s20, 1 }
   0x8   : > { %s896_s24 = scalar_select %p111_p1, %s827_s17, %s113_s22  }
   0x9   : > { %p898_p5 = por %p124_p2, %p123_p0  ;;  %p902_p6 = por %p130_p4, %p129_p3 }
   0xa   : > { %p635_p7 = scmp.ge.s32.totalorder %s831_s18, 1  ;;  %p167_p8 = scmp.lt.s32.totalorder %s831_s18, 3 }
   0xc   : > { %p168_p9 = pnand %p635_p7, %p167_p8 }
   0xd   : > { %s637_s29 = sshll.u32 (!%p168_p9), %s881_s19, 3  ;;  %s191_s10 = sand.u32 (!%p168_p9), 1, %s823_s16  }
   0xe   : > { %171 = sbr.rel (%p168_p9) target bundleno = 371 (0x173), region = 36  ;;  %p195_p10 = scmp.lt.s32.totalorder (!%p168_p9), %s637_s29, 15 }
   0xf   : > { %s636_s11 = sshll.u32 (!%p168_p9), %s191_s10, 7  ;;  %s723_s20 = sshll.u32 (!%p168_p9), %s881_s19, 7 }
  0x10   : > { %s940_s14 = scalar_lea.vmem (!%p168_p9), [#allocation2], %s636_s11  ;;  %s566_s27 = scalar_lea.hbm (!%p168_p9), %s1012_s4, %s723_s20 }
  0x11   : > { %s567_s28 = sshll.u32 (!%p168_p9), %s940_s14, 4  ;;  %s554_s19 = scalar_lea.sflag (!%p168_p9), [#allocation3], %s191_s10  ;;  %s568_s28 = int_to_ptr.vmem [resolvable:$true] %s567_s28 }
  0x12   : > { %s789_s8 = scalar_lea.hbm (!%p168_p9), %s1012_s4, 256 }
  0x13   : > { %v219_v0 = vld [vmem:[%s1009_s1] sm:$0xf]  ;;  %vm285_vm0 = vcmask 1043456   ;;  %s1020_s29 = smov (!%p195_p10, %s637_s29), 15  ;;  %vm260_vm1 = vcmask 64512   ;;  %vm371_vm2 = vcmask 130048  }
  0x14   : > { %v287_v1 = vsel %vm285_vm0, %v219_v0, 0  ;;  %s712_s30 = sshll.u32 %s1020_s29, 3  ;;  %v721_v21 = vld [vmem:[%s1010_s2] sm:$0xff]  ;;  %vm389_vm3 = vcmask 261120   ;;  %s569_s29 = sshll.u32 %s566_s27, 4  ;;  %s570_s29 = int_to_ptr.hbm [resolvable:$true] %s569_s29 }
  0x15   : > { %296 = vmatpush.bf16.msra.mxu0 %v287_v1  ;;  %726 = vmatpush.bf16.msra.mxu3 %v287_v1  ;;  %s199_s7 = scalar_lea.vmem %s1008_s0, %s712_s30  ;;  %s783_s30 = sshra.s32 %s570_s29, 4  ;;  %s784_s30 = int_to_ptr.hbm [resolvable:$true] %s783_s30 }
  0x16   : > { %724 = vmatpush.bf16.msra.mxu1 %v287_v1  ;;  %725 = vmatpush.bf16.msra.mxu2 %v287_v1  ;;  %v713_v2 = vld [vmem:[%s199_s7] sm:$0xff]  ;;  %v719_v3 = vld [vmem:[%s199_s7 + $0x30] sm:$0xff]  ;;  %v718_v5 = vld [vmem:[%s199_s7 + $0x28] sm:$0xff]  ;;  %s785_s5 = scalar_lea.hbm %s784_s30, 128  ;;  %p790_p0 = scmp.lt.s32.totalorder %s784_s30, %s1012_s4 }
  0x17   : > { %v717_v4 = vld [vmem:[%s199_s7 + $0x20] sm:$0xff]  ;;  %v714_v6 = vld [vmem:[%s199_s7 + $0x8] sm:$0xff]  ;;  %v720_v7 = vld [vmem:[%s199_s7 + $0x38] sm:$0xff]  ;;  %p786_p11 = scmp.ne.s32.totalorder %s784_s30, %s785_s5  ;;  %p791_p1 = scmp.lt.s32.totalorder %s789_s8, %s785_s5 }
  0x18   : > { %672 = vmatmul.msk.bf16.vlgmr.msra.gmra.mxu0 %vm260_vm1, %v713_v2  ;;  %678 = vmatmul.msk.bf16.vlgmr.msra.gmra.mxu3 %vm260_vm1, %v719_v3  ;;  %v715_v8 = vld [vmem:[%s199_s7 + $0x10] sm:$0xff]  ;;  %v716_v9 = vld [vmem:[%s199_s7 + $0x18] sm:$0xff]  ;;  %v768_v3 = vld [vmem:[%s1011_s3] ss:$0 sm:$0xff] }
  0x19   : > { %676 = vmatmul.msk.bf16.vlgmr.msra.gmra.mxu1 %vm260_vm1, %v717_v4  ;;  %677 = vmatmul.msk.bf16.vlgmr.msra.gmra.mxu2 %vm260_vm1, %v718_v5  ;;  %p787_p12 = pnand %p786_p11, %p898_p5  ;;  %p792_p2 = por %p791_p1, %p790_p0 }
  0x1b   : > { %p788_p13 = pneg %p787_p12 }
  0x1d   : > { %p793_p3 = pnand %p792_p2, %p788_p13 }
  0x28   : > { %673 = vmatmul.msk.bf16.gmra.mxu0 %vm260_vm1, %v714_v6  ;;  %679 = vmatmul.msk.bf16.gmra.mxu3 %vm260_vm1, %v720_v7 }
  0x38   : > { %674 = vmatmul.msk.bf16.gmra.mxu0 %vm260_vm1, %v715_v8 }
  0x48   : > { %675 = vmatmul.msk.bf16.gmra.mxu0 %vm260_vm1, %v716_v9 }
  0x95   : > { %v298_v10 = vpop.f32.mrf.mxu0 }
  0x96   : > { %v338_v11 = vpack.c.bf16 %v298_v10, %v298_v10  ;;  %v318_v12 = vpop.f32.mrf.mxu1 }
  0x97   : > { %v346_v23 = vpack.c.bf16 %v318_v12, %v318_v12 }
  0x98   : > { %v367_v16 = vunpack.c.l.b16 %v338_v11 }
  0x99   : > { %v463_v29 = vunpack.c.l.b16 %v346_v23 }
  0x9b   : > { %v328_v13 = vpop.f32.mrf.mxu3 }
  0x9c   : > { %v323_v26 = vpop.f32.mrf.mxu2  ;;  %v350_v56 = vpack.c.bf16 %v328_v13, %v328_v13 }
  0x9d   : > { %v300_v14 = vpop.f32.mrf.mxu0  ;;  %v348_v43 = vpack.c.bf16 %v323_v26, %v323_v26 }
  0x9e   : > { %v339_v15 = vpack.c.bf16 %v300_v14, %v300_v14  ;;  %v320_v22 = vpop.f32.mrf.mxu1  ;;  %v509_v61 = vunpack.c.l.b16 %v350_v56 }
  0x9f   : > { %v347_v24 = vpack.c.bf16 %v320_v22, %v320_v22  ;;  %v486_v48 = vunpack.c.l.b16 %v348_v43 }
  0xa0   : > { %v368_v17 = vunpack.c.l.b16 %v339_v15 }
  0xa1   : > { %v464_v30 = vunpack.c.l.b16 %v347_v24 }
  0xa2   : > { %v369_v18 = vpack.c.b16 %v368_v17, %v367_v16 }
  0xa3   : > { %v330_v19 = vpop.f32.mrf.mxu3  ;;  %v465_v34 = vpack.c.b16 %v464_v30, %v463_v29 }
  0xa4   : > { %382 = vmatpush.bf16.msrb.mxu1 %v369_v18  ;;  %v325_v41 = vpop.f32.mrf.mxu2  ;;  %v351_v57 = vpack.c.bf16 %v330_v19, %v330_v19 }
  0xa5   : > { %v303_v20 = vpop.f32.mrf.mxu0  ;;  %v349_v44 = vpack.c.bf16 %v325_v41, %v325_v41 }
  0xa6   : > { %v340_v25 = vpack.c.bf16 %v303_v20, %v303_v20  ;;  %v510_v62 = vunpack.c.l.b16 %v351_v57 }
  0xa7   : > { %684 = vmatmul.msk.bf16.vlgmr.msrb.gmra.mxu1 %vm371_vm2, %v721_v21  ;;  %v487_v49 = vunpack.c.l.b16 %v349_v44 }
  0xa8   : > { %v394_v32 = vunpack.c.l.b16 %v340_v25  ;;  %v511_v2 = vpack.c.b16 %v510_v62, %v509_v61 }
  0xa9   : > { %v488_v53 = vpack.c.b16 %v487_v49, %v486_v48 }
  0xab   : > { %v333_v27 = vpop.f32.mrf.mxu3 }
  0xac   : > { %v352_v35 = vpack.c.bf16 %v333_v27, %v333_v27 }
  0xad   : > { %v305_v28 = vpop.f32.mrf.mxu0 }
  0xae   : > { %v341_v31 = vpack.c.bf16 %v305_v28, %v305_v28  ;;  %v532_v39 = vunpack.c.l.b16 %v352_v35 }
  0xb0   : > { %v395_v33 = vunpack.c.l.b16 %v341_v31 }
  0xb2   : > { %v396_v36 = vpack.c.b16 %v395_v33, %v394_v32 }
  0xb3   : > { %v335_v37 = vpop.f32.mrf.mxu3 }
  0xb4   : > { %405 = vmatpush.bf16.msrb.mxu2 %v396_v36  ;;  %v353_v40 = vpack.c.bf16 %v335_v37, %v335_v37 }
  0xb5   : > { %v308_v38 = vpop.f32.mrf.mxu0 }
  0xb6   : > { %v533_v42 = vunpack.c.l.b16 %v353_v40  ;;  %v342_v46 = vpack.c.bf16 %v308_v38, %v308_v38 }
  0xb7   : > { %685 = vmatmul.msk.bf16.vlgmr.msrb.gmra.mxu2 %vm371_vm2, %v721_v21 }
  0xb8   : > { %474 = vmatpush.bf16.msra.mxu2 %v465_v34  ;;  %v534_v45 = vpack.c.b16 %v533_v42, %v532_v39  ;;  %v417_v51 = vunpack.c.l.b16 %v342_v46 }
  0xbc   : > { %543 = vmatpush.bf16.msrb.mxu2 %v534_v45 }
  0xbd   : > { %v310_v47 = vpop.f32.mrf.mxu0 }
  0xbe   : > { %v343_v50 = vpack.c.bf16 %v310_v47, %v310_v47 }
  0xc0   : > { %v418_v52 = vunpack.c.l.b16 %v343_v50 }
  0xc2   : > { %v419_v54 = vpack.c.b16 %v418_v52, %v417_v51 }
  0xc4   : > { %428 = vmatpush.bf16.msrb.mxu3 %v419_v54 }
  0xc5   : > { %v313_v55 = vpop.f32.mrf.mxu0 }
  0xc6   : > { %v344_v58 = vpack.c.bf16 %v313_v55, %v313_v55 }
  0xc7   : > { %688 = vmatmul.msk.bf16.vlgmr.msrb.gmra.mxu3 %vm371_vm2, %v721_v21  ;;  %694 = vmatmul.msk.bf16.vlgmr.msra.gmra.mxu2 %vm371_vm2, %v721_v21 }
  0xc8   : > { %497 = vmatpush.bf16.msra.mxu3 %v488_v53  ;;  %v440_v63 = vunpack.c.l.b16 %v344_v58 }
  0xcd   : > { %v315_v59 = vpop.f32.mrf.mxu0 }
  0xce   : > { %v345_v60 = vpack.c.bf16 %v315_v59, %v315_v59 }
  0xd0   : > { %v441_v0 = vunpack.c.l.b16 %v345_v60 }
  0xd2   : > { %v442_v1 = vpack.c.b16 %v441_v0, %v440_v63 }
  0xd4   : > { %451 = vmatpush.bf16.msra.mxu1 %v442_v1 }
  0xd7   : > { %691 = vmatmul.msk.bf16.vlgmr.msra.gmra.mxu1 %vm371_vm2, %v721_v21  ;;  %697 = vmatmul.msk.bf16.vlgmr.msra.gmra.mxu3 %vm371_vm2, %v721_v21 }
  0xd8   : > { %520 = vmatpush.bf16.msrb.mxu1 %v511_v2  ;;  %703 = vmatmul.msk.bf16.vlgmr.msrb.gmra.mxu2 %vm371_vm2, %v721_v21 }
  0xe7   : > { %700 = vmatmul.msk.bf16.vlgmr.msrb.gmra.mxu1 %vm371_vm2, %v721_v21 }
 0x124   : > { %v384_v4 = vpop.f32.mrf.mxu1 }
 0x125   : > { %v385_v5 = vadd.f32 %v768_v3, %v384_v4 }
 0x127   : > { %390 = vst.msk [vmem:[%s940_s14] sm:$0xff] %vm389_vm3, %v385_v5 }
 0x12c   : > { %v386_v6 = vpop.f32.mrf.mxu1 }
 0x12d   : > { %v387_v7 = vadd.f32 %v768_v3, %v386_v6 }
 0x12f   : > { %391 = vst.msk [vmem:[%s940_s14 + $0x8] sm:$0xff] %vm389_vm3, %v387_v7 }
 0x13a   : > { %v407_v8 = vpop.f32.mrf.mxu2 }
 0x13b   : > { %v408_v9 = vadd.f32 %v768_v3, %v407_v8 }
 0x13d   : > { %686 = vst.msk [vmem:[%s940_s14 + $0x10] sm:$0xff] %vm389_vm3, %v408_v9 }
 0x142   : > { %v409_v10 = vpop.f32.mrf.mxu2 }
 0x143   : > { %v410_v11 = vadd.f32 %v768_v3, %v409_v10 }
 0x145   : > { %687 = vst.msk [vmem:[%s940_s14 + $0x18] sm:$0xff] %vm389_vm3, %v410_v11 }
 0x14a   : > { %v430_v12 = vpop.f32.mrf.mxu3  ;;  %v476_v13 = vpop.f32.mrf.mxu2 }
 0x14b   : > { %v431_v14 = vadd.f32 %v768_v3, %v430_v12  ;;  %v477_v15 = vadd.f32 %v768_v3, %v476_v13 }
 0x14d   : > { %689 = vst.msk [vmem:[%s940_s14 + $0x20] sm:$0xff] %vm389_vm3, %v431_v14 }
 0x14e   : > { %695 = vst.msk [vmem:[%s940_s14 + $0x40] sm:$0xff] %vm389_vm3, %v477_v15 }
 0x152   : > { %v432_v16 = vpop.f32.mrf.mxu3  ;;  %v478_v17 = vpop.f32.mrf.mxu2 }
 0x153   : > { %v433_v18 = vadd.f32 %v768_v3, %v432_v16  ;;  %v479_v19 = vadd.f32 %v768_v3, %v478_v17 }
 0x154   : > { %v453_v20 = vpop.f32.mrf.mxu1 }
 0x155   : > { %v454_v21 = vadd.f32 %v768_v3, %v453_v20  ;;  %690 = vst.msk [vmem:[%s940_s14 + $0x28] sm:$0xff] %vm389_vm3, %v433_v18 }
 0x156   : > { %696 = vst.msk [vmem:[%s940_s14 + $0x48] sm:$0xff] %vm389_vm3, %v479_v19 }
 0x157   : > { %692 = vst.msk [vmem:[%s940_s14 + $0x30] sm:$0xff] %vm389_vm3, %v454_v21 }
 0x15a   : > { %v499_v22 = vpop.f32.mrf.mxu3 }
 0x15b   : > { %v500_v23 = vadd.f32 %v768_v3, %v499_v22  ;;  %v545_v24 = vpop.f32.mrf.mxu2 }
 0x15c   : > { %v455_v25 = vpop.f32.mrf.mxu1  ;;  %v546_v26 = vadd.f32 %v768_v3, %v545_v24 }
 0x15d   : > { %v456_v27 = vadd.f32 %v768_v3, %v455_v25  ;;  %698 = vst.msk [vmem:[%s940_s14 + $0x50] sm:$0xff] %vm389_vm3, %v500_v23 }
 0x15e   : > { %704 = vst.msk [vmem:[%s940_s14 + $0x70] sm:$0xff] %vm389_vm3, %v546_v26 }
 0x15f   : > { %693 = vst.msk [vmem:[%s940_s14 + $0x38] sm:$0xff] %vm389_vm3, %v456_v27 }
 0x162   : > { %v501_v28 = vpop.f32.mrf.mxu3 }
 0x163   : > { %v502_v29 = vadd.f32 %v768_v3, %v501_v28  ;;  %v547_v30 = vpop.f32.mrf.mxu2 }
 0x164   : > { %v522_v31 = vpop.f32.mrf.mxu1  ;;  %v548_v32 = vadd.f32 %v768_v3, %v547_v30 }
 0x165   : > { %v523_v33 = vadd.f32 %v768_v3, %v522_v31  ;;  %699 = vst.msk [vmem:[%s940_s14 + $0x58] sm:$0xff] %vm389_vm3, %v502_v29 }
 0x166   : > { %705 = vst.msk [vmem:[%s940_s14 + $0x78] sm:$0xff] %vm389_vm3, %v548_v32 }
 0x167   : > { %701 = vst.msk [vmem:[%s940_s14 + $0x60] sm:$0xff] %vm389_vm3, %v523_v33 }
 0x16c   : > { %v524_v34 = vpop.f32.mrf.mxu1 }
 0x16d   : > { %v525_v35 = vadd.f32 %v768_v3, %v524_v34 }
 0x16f   : > { %702 = vst.msk [vmem:[%s940_s14 + $0x68] sm:$0xff] %vm389_vm3, %v525_v35 }
 0x170   : > { %796 = shalt.err (!%p793_p3)
}
 0x171   : > { %s833_s10 = smov 128   ;;  %s834_s12 = smov 8  }
 0x172   : > { %727 = dma.vmem_to_hbm [thread:$0]  (%p898_p5), %s568_s28, 2048, %s570_s29, %s554_s19, %s833_s10, %s833_s10, %s834_s12  }
 0x173 PF: > { %p733_p4 = scmp.ge.s32.totalorder %s831_s18, 2  ;;  %s584_s13 = sand.u32 1, %s819_s15  }
 0x174   : > { %s585_s14 = scalar_lea.sflag [#allocation3], %s584_s13 }
 0x175   : > { %p730_p7 = pnand %p733_p4, %p902_p6 }
 0x177   : > { %p731_p8 = pneg %p730_p7 }
 0x179   : > { %814 = dma.done.wait (%p731_p8), %s585_s14, 2048  }
 0x17a   : > { %816 = vsyncadd (%p731_p8), %s585_s14, 4294965248  ;;  %p14_p9 = scmp.ge.s32.totalorder %s885_s21, 4   ;;  %s1015_s15 = smov %s823_s16 }
 0x17b   : > { %s1016_s16 = smov %s827_s17  ;;  %s1017_s17 = smov %s896_s24 }
 0x17c   : > { %s1018_s18 = smov %s885_s21  ;;  %16 = sbr.rel (!%p14_p9) target bundleno = 3 (0x3), region = 78 }
 0x181   :  { %591 = vsyncpa [#allocation3], 1 }
 0x182   :  { %593 = vsyncpa [#allocation3 + $0x1], 1 }

</bundles_post_ra>
